<compile_context>
chip_gen: v5e
topology: v5e:2x2
jax: 0.10.0
libtpu: 0.0.40
codegen_flags: <defaults>
</compile_context>

<pallas_src>
import math
import jax
import jax.numpy as jnp
from jax.experimental import pallas as pl
from jax.experimental.pallas import tpu as pltpu

SEQ_LEN = 16  # max_len used by the module's __init__


def make_positional_encoding(d_model: int, max_len: int = SEQ_LEN) -> jnp.ndarray:
    """Deterministic PE table matching the torch code: shape (max_len, d_model).

    Requires even d_model (same assumption as the PyTorch interleave).
    """
    position = jnp.arange(0, max_len, dtype=jnp.float32)[:, None]            # (L, 1)
    div_term = jnp.exp(jnp.arange(0, d_model, 2, dtype=jnp.float32)
                       * (-math.log(10000.0) / d_model))                     # (D/2,)
    sin_part = jnp.sin(position * div_term)                                  # (L, D/2)
    cos_part = jnp.cos(position * div_term)                                  # (L, D/2)
    # interleave: even columns = sin, odd columns = cos
    pe = jnp.stack([sin_part, cos_part], axis=-1).reshape(max_len, d_model)
    return pe


def _pe_add_kernel(x_ref, pe_ref, o_ref):
    # x_ref / o_ref: (ts, tb, D); pe_ref: (ts, 1, D) -> broadcasts over batch.
    o_ref[...] = x_ref[...] + pe_ref[...]


def _vmem_budget():
    """Generation-aware (tile_budget_bytes, vmem_limit_bytes)."""
    cap = None
    try:
        info = pltpu.get_tpu_info()
        cap = getattr(info, "vmem_capacity_bytes", None)
    except Exception:
        cap = None
    if not cap:
        cap = 64 * 1024 * 1024  # conservative default: v7x per-TC VMEM
    # Keep the scoped limit well under physical VMEM; cap at 96 MiB.
    vmem_limit = min((cap * 3) // 4, 96 * 1024 * 1024)
    # Double-buffered input + double-buffered output = 4 tile-sized buffers,
    # plus the small pe block and headroom -> tile <= vmem_limit / 8.
    tile_budget = min(8 * 1024 * 1024, vmem_limit // 8)
    return tile_budget, vmem_limit


def _tile_sizes(S, B, D, itemsize, tile_budget_bytes):
    """Pick (ts, tb): seq tile (primary) and batch tile (fallback only)."""
    row_bytes = B * D * itemsize
    if row_bytes <= tile_budget_bytes:
        # Common path: full (B, D) per block, tile the contiguous seq axis.
        ts = min(S, max(1, tile_budget_bytes // row_bytes))
        tb = B
    else:
        # One seq row alone exceeds the budget -> also tile batch.
        # dtype-aware sublane alignment: 8 (f32), 16 (bf16), 32 (int8/fp8).
        sub = {4: 8, 2: 16, 1: 32}.get(itemsize, 8)
        ts = 1
        tb = max(sub, ((tile_budget_bytes // (D * itemsize)) // sub) * sub)
        tb = min(tb, B)
        # NOTE: if even (sub, D) exceeds the budget, D itself is enormous
        # (>~1.5M f32 elems/row); unrealistic for d_model, not handled.
    # Guarantee enough grid steps for v7x megacore sharding + pipelining.
    min_steps = min(S, 8)
    n_steps = ((S + ts - 1) // ts) * ((B + tb - 1) // tb)
    if n_steps < min_steps:
        ts = max(1, (S + min_steps - 1) // min_steps)
    return ts, tb


def positional_encoding_forward(x: jnp.ndarray, pe_full: jnp.ndarray,
                                *, donate_x: bool = False) -> jnp.ndarray:
    """Pallas path. x: (seq_len, batch, d_model); pe_full: (max_len, d_model)."""
    S, B, D = x.shape
    # Wrapper-side shape plumbing: slice to seq length, match dtype, add the
    # broadcast axis so the kernel body is a plain elementwise add.
    # (bf16 x => bf16 pe => bf16 out; torch's f32 buffer would promote to f32.)
    pe = pe_full[:S].astype(x.dtype).reshape(S, 1, D)

    itemsize = x.dtype.itemsize
    tile_budget_bytes, vmem_limit_bytes = _vmem_budget()
    ts, tb = _tile_sizes(S, B, D, itemsize, tile_budget_bytes)

    grid = (pl.cdiv(S, ts), pl.cdiv(B, tb))

    call_kwargs = {}
    if donate_x:
        # Only at call sites that actually donate x (output aliases x's buffer).
        call_kwargs["input_output_aliases"] = {0: 0}

    return pl.pallas_call(
        _pe_add_kernel,
        out_shape=jax.ShapeDtypeStruct((S, B, D), x.dtype),
        grid_spec=pltpu.PrefetchScalarGridSpec(
            num_scalar_prefetch=0,
            grid=grid,
            in_specs=[
                # x: one contiguous (ts, tb, D) slab per grid step.
                pl.BlockSpec((ts, tb, D), lambda s, b: (s, b, 0)),
                # pe: depends only on the seq step; resident across the batch
                # axis (inner grid dim), tiny either way.
                pl.BlockSpec((ts, 1, D), lambda s, b: (s, 0, 0)),
            ],
            out_specs=pl.BlockSpec((ts, tb, D), lambda s, b: (s, b, 0)),
        ),
        compiler_params=pltpu.CompilerParams(
            # Every grid step is independent -> shardable across v7x's 2 TCs.
            dimension_semantics=("parallel", "parallel"),
            vmem_limit_bytes=vmem_limit_bytes,
        ),
        **call_kwargs,
    )(x, pe)


def apply_positional_encoding(x: jnp.ndarray, pe_full: jnp.ndarray,
                              *, force_pallas: bool = False) -> jnp.ndarray:
    """Dispatch: tiny arrays go to plain XLA (launch/pipeline overhead dominates)."""
    if not force_pallas and x.size * x.dtype.itemsize < (1 << 20):
        return x + pe_full[: x.shape[0]].astype(x.dtype)[:, None, :]
    return positional_encoding_forward(x, pe_full)


if __name__ == "__main__":
    d_model = 32
    seq_len = 8
    batch = 2

    key = jax.random.PRNGKey(0)
    x = jax.random.normal(key, (seq_len, batch, d_model), dtype=jnp.float32)

    pe_full = make_positional_encoding(d_model, max_len=SEQ_LEN)

    # Force the Pallas path so the kernel itself is exercised at demo size.
    out = positional_encoding_forward(x, pe_full)
    out = jax.block_until_ready(out)

    # reference check (plain JAX)
    ref = x + pe_full[:seq_len][:, None, :]
    assert out.shape == x.shape
    assert out.dtype == x.dtype
    assert jnp.allclose(out, ref, atol=1e-6), "mismatch vs reference"

    print("KERNEL_OK")
</pallas_src>

<mosaic_0001>
module attributes {stable_mosaic.version = 11 : i64} {
  func.func @_pe_add_kernel(%arg0: i32, %arg1: i32, %arg2: memref<1x2x32xf32, #tpu.memory_space<vmem>>, %arg3: memref<1x1x32xf32, #tpu.memory_space<vmem>>, %arg4: memref<1x2x32xf32, #tpu.memory_space<vmem>>) attributes {dimension_semantics = [#tpu.dimension_semantics<parallel>, #tpu.dimension_semantics<parallel>], iteration_bounds = array<i64: 8, 1>, scalar_prefetch = 0 : i64, scratch_operands = 0 : i64, tpu.core_type = #tpu.core_type<tc>, window_params = [{transform_indices = @transform_0, window_bounds = array<i64: 1, 2, 32>}, {transform_indices = @transform_1, window_bounds = array<i64: 1, 1, 32>}, {transform_indices = @transform_2, window_bounds = array<i64: 1, 2, 32>}]} {
    %c0 = arith.constant 0 : index
    %c0_0 = arith.constant 0 : index
    %c0_1 = arith.constant 0 : index
    %0 = vector.load %arg2[%c0, %c0_0, %c0_1] : memref<1x2x32xf32, #tpu.memory_space<vmem>>, vector<1x2x32xf32>
    %c0_2 = arith.constant 0 : index
    %c0_3 = arith.constant 0 : index
    %c0_4 = arith.constant 0 : index
    %1 = vector.load %arg3[%c0_2, %c0_3, %c0_4] : memref<1x1x32xf32, #tpu.memory_space<vmem>>, vector<1x1x32xf32>
    %2 = vector.broadcast %1 : vector<1x1x32xf32> to vector<1x2x32xf32>
    %3 = arith.addf %0, %2 : vector<1x2x32xf32>
    %c0_5 = arith.constant 0 : index
    %c0_6 = arith.constant 0 : index
    %c0_7 = arith.constant 0 : index
    %4 = vector.load %arg4[%c0_5, %c0_6, %c0_7] : memref<1x2x32xf32, #tpu.memory_space<vmem>>, vector<1x2x32xf32>
    tpu.vector_store %arg4[%c0_5, %c0_6, %c0_7], %3 {strides = array<i32>} : memref<1x2x32xf32, #tpu.memory_space<vmem>>, vector<1x2x32xf32>,
    return
  }
  func.func @transform_0(%arg0: i32, %arg1: i32) -> (i32, i32, i32) {
    %c0_i32 = arith.constant 0 : i32
    %c0_i32_0 = arith.constant 0 : i32
    return %arg0, %arg1, %c0_i32 : i32, i32, i32
  }
  func.func @transform_1(%arg0: i32, %arg1: i32) -> (i32, i32, i32) {
    %c0_i32 = arith.constant 0 : i32
    %c0_i32_0 = arith.constant 0 : i32
    %c0_i32_1 = arith.constant 0 : i32
    return %arg0, %c0_i32, %c0_i32_0 : i32, i32, i32
  }
  func.func @transform_2(%arg0: i32, %arg1: i32) -> (i32, i32, i32) {
    %c0_i32 = arith.constant 0 : i32
    %c0_i32_0 = arith.constant 0 : i32
    return %arg0, %arg1, %c0_i32 : i32, i32, i32
  }
}

</mosaic_0001>

<bundles_post_ra>
// kernel: tpu_custom_call.1
= control target key start
LH: loop header
LB: loop body
LE: loop exit
PB: predicated region body
PF: predicated region fallthrough
CT: control target
= control target key end

     0   :  { %7 = vsyncpa [#allocation3], 0  ;;  %s709_s0 = inlined_call_operand.hbm [shape: f32[8,2,32], index: 0, kind: input, shape index: {}]   ;;  %s710_s1 = inlined_call_operand.hbm [shape: f32[8,1,32], index: 1, kind: input, shape index: {}]   ;;  %s711_s2 = inlined_call_operand.hbm [shape: f32[8,2,32], index: 2, kind: output, shape index: {}]  }
   0x1   :  { %9 = vsyncpa [#allocation3 + $0x1], 0 }
   0x2   :  { %10 = vsyncpa [#allocation6], 0 }
   0x3   :  { %12 = vsyncpa [#allocation6 + $0x1], 0 }
   0x4   :  { %13 = vsyncpa [#allocation4], 0 }
   0x5   :  { %15 = vsyncpa [#allocation4 + $0x1], 0  ;;  %s581_s9 = smov 0   ;;  %s583_s10 = smov 0  }
   0x6   :  { %s585_s11 = smov 0   ;;  %s587_s12 = smov 0  }
   0x7   :  { %s589_s13 = smov 0   ;;  %s591_s14 = smov 0  }
   0x8 LB: > { %s337_s15 = sadd.s32 4294967295, %s564_s14   ;;  %s338_s16 = sadd.s32 4294967294, %s564_s14   ;;  %s564_s14 = sphi %s591_s14, %s21_s14   ;;  %s560_s13 = sphi %s589_s13, %s720_s13   ;;  %s556_s12 = sphi %s587_s12, %s719_s12   ;;  %s552_s11 = sphi %s585_s11, %s718_s11   ;;  %s548_s10 = sphi %s583_s10, %s717_s10   ;;  %s544_s9 = sphi %s581_s9, %s716_s9  }
   0x9   : > { %s33_s17 = sadd.s32 1, %s560_s13  ;;  %s42_s18 = sadd.s32 1, %s552_s11 }
   0xa   : > { %p35_p0 = scmp.ge.s32.totalorder %s33_s17, 8  ;;  %p49_p1 = scmp.ne.s32.totalorder %s552_s11, %s548_s10 }
   0xb   : > { %p50_p2 = scmp.eq.s32.totalorder %s564_s14, 0  ;;  %p55_p3 = scmp.ne.s32.totalorder %s548_s10, %s544_s9 }
   0xc   : > { %s722_s17 = smov (%p35_p0, %s33_s17), 0  ;;  %p56_p5 = scmp.eq.s32.totalorder %s337_s15, 0 }
   0xd   : > { %p622_p4 = por %p50_p2, %p49_p1  ;;  %s37_s20 = ssub.s32 %s560_s13, %s722_s17 }
   0xe   : > { %p107_p6 = scmp.eq.s32.totalorder %s337_s15, 7  ;;  %p40_p7 = scmp.eq.s32.totalorder %s37_s20, 0 }
   0xf   : > { %p628_p8 = por %p56_p5, %p55_p3  ;;  %p113_p10 = scmp.eq.s32.totalorder %s338_s16, 7 }
  0x10   : > { %p632_p9 = por %p107_p6, %p49_p1  ;;  %p367_p12 = scmp.lt.s32.totalorder %s564_s14, 8 }
  0x11   : > { %s637_s23 = scalar_select %p40_p7, %s552_s11, %s42_s18  }
  0x12   : > { %p639_p11 = por %p113_p10, %p55_p3  ;;  %s133_s25 = sand.u32 1, %s552_s11  }
  0x13   : > { %s341_s26 = sshll.u32 %s133_s25, 1  ;;  %s342_s27 = sshll.u32 %s560_s13, 1 }
  0x14   : > { %s142_s30 = scalar_lea.hbm %s709_s0, %s342_s27  ;;  %s137_s3 = scalar_lea.vmem [#allocation2], %s341_s26 }
  0x15   : > { %s146_s4 = sshll.u32 %s137_s3, 4  ;;  %s144_s5 = sshll.u32 %s142_s30, 4  ;;  %s147_s4 = int_to_ptr.vmem [resolvable:$true] %s146_s4  ;;  %s145_s5 = int_to_ptr.hbm [resolvable:$true] %s144_s5 }
  0x16   : > { %p357_p13 = pnand %p367_p12, %p622_p4  ;;  %p343_p0 = scmp.ge.s32.totalorder %s564_s14, 1 }
  0x17   : > { %p168_p1 = scmp.lt.s32.totalorder %s564_s14, 9  ;;  %s134_s6 = scalar_lea.sflag [#allocation3], %s133_s25 }
  0x18   : > { %359 = dma.hbm_to_vmem [thread:$0]  (!%p357_p13), %s145_s5, 32, %s147_s4, %s134_s6  }
  0x19   : > { %p169_p2 = pnand %p343_p0, %p168_p1  ;;  %s159_s15 = scalar_lea.hbm %s710_s1, %s560_s13 }
  0x1a   : > { %s156_s16 = scalar_lea.vmem [#allocation5], %s133_s25  ;;  %s161_s20 = sshll.u32 %s159_s15, 4  ;;  %s162_s20 = int_to_ptr.hbm [resolvable:$true] %s161_s20 }
  0x1b   : > { %s163_s18 = sshll.u32 %s156_s16, 4  ;;  %s154_s26 = scalar_lea.sflag [#allocation6], %s133_s25  ;;  %s164_s18 = int_to_ptr.vmem [resolvable:$true] %s163_s18 }
  0x1c   : > { %362 = dma.hbm_to_vmem [thread:$0]  (!%p357_p13), %s162_s20, 16, %s164_s18, %s154_s26  }
  0x1d   : > { %172 = sbr.rel (%p169_p2) target bundleno = 52 (0x34), region = 28  ;;  %s658_s19 = sand.u32 (!%p169_p2), 1, %s548_s10  }
  0x1e   : > { %s344_s27 = sshll.u32 (!%p169_p2), %s658_s19, 1  ;;  %s175_s28 = scalar_lea.sflag (!%p169_p2), [#allocation3], %s658_s19 }
  0x1f   : > { %s178_s29 = scalar_lea.vmem (!%p169_p2), [#allocation2], %s344_s27 }
  0x22   : > { %531 = dma.done.wait (%p628_p8), %s175_s28, 32  }
  0x23   : > { %533 = vsyncadd (%p628_p8), %s175_s28, 4294967264  ;;  %s185_s25 = scalar_lea.sflag [#allocation6], %s658_s19  ;;  %s187_s30 = scalar_lea.vmem [#allocation5], %s658_s19 }
  0x24   : > { %535 = dma.done.wait (%p628_p8), %s185_s25, 16  }
  0x25   : > { %537 = vsyncadd (%p628_p8), %s185_s25, 4294967280  ;;  %s347_s3 = sshll.u32 %s556_s12, 1  ;;  %s212_s7 = scalar_lea.vmem [#allocation7], %s344_s27  ;;  %v213_v0 = vld [vmem:[%s178_s29] sm:$0x3]  ;;  %vm219_vm0 = vcmask 254976  }
  0x26   : > { %s233_s6 = scalar_lea.hbm %s711_s2, %s347_s3  ;;  %s235_s8 = sshll.u32 %s212_s7, 4  ;;  %v417_v1 = vld [vmem:[%s187_s30] ss:$0 sm:$0xff]  ;;  %s236_s8 = int_to_ptr.vmem [resolvable:$true] %s235_s8 }
  0x27   : > { %s237_s15 = sshll.u32 %s233_s6, 4  ;;  %v218_v2 = vadd.f32 %v417_v1, %v213_v0  ;;  %s222_s21 = scalar_lea.sflag [#allocation4], %s658_s19  ;;  %s238_s15 = int_to_ptr.hbm [resolvable:$true] %s237_s15 }
  0x28   : > { %s492_s16 = sshra.s32 %s238_s15, 4  ;;  %s498_s26 = scalar_lea.hbm %s711_s2, 16  ;;  %s493_s16 = int_to_ptr.hbm [resolvable:$true] %s492_s16 }
  0x29   : > { %220 = vst.msk [vmem:[%s212_s7] sm:$0x3] %vm219_vm0, %v218_v2  ;;  %s494_s18 = scalar_lea.hbm %s493_s16, 2  ;;  %p499_p6 = scmp.lt.s32.totalorder %s493_s16, %s711_s2 }
  0x2a   : > { %p495_p3 = scmp.ne.s32.totalorder %s493_s16, %s494_s18  ;;  %p500_p7 = scmp.lt.s32.totalorder %s498_s26, %s494_s18 }
  0x2c   : > { %p496_p4 = pnand %p495_p3, %p632_p9  ;;  %p501_p8 = por %p500_p7, %p499_p6 }
  0x2e   : > { %p497_p5 = pneg %p496_p4 }
  0x30   : > { %p502_p10 = pnand %p501_p8, %p497_p5 }
  0x32   : > { %505 = shalt.err (!%p502_p10)
}
  0x33   : > { %354 = dma.vmem_to_hbm [thread:$0]  (%p632_p9), %s236_s8, 32, %s238_s15, %s222_s21  }
  0x34 PF: > { %p368_p12 = scmp.ge.s32.totalorder %s564_s14, 2  ;;  %s249_s19 = sand.u32 1, %s544_s9  }
  0x35   : > { %s250_s29 = scalar_lea.sflag [#allocation4], %s249_s19 }
  0x36   : > { %p364_p13 = pnand %p368_p12, %p639_p11 }
  0x38   : > { %p365_p0 = pneg %p364_p13 }
  0x3a   : > { %539 = dma.done.wait (%p365_p0), %s250_s29, 32  }
  0x3b   : > { %541 = vsyncadd (%p365_p0), %s250_s29, 4294967264  ;;  %s21_s14 = sadd.s32 1, %s564_s14   ;;  %s716_s9 = smov %s548_s10 }
  0x3c   : > { %p18_p1 = scmp.ge.s32.totalorder %s21_s14, 10   ;;  %s717_s10 = smov %s552_s11 }
  0x3d   : > { %s718_s11 = smov %s637_s23  ;;  %s719_s12 = smov %s560_s13 }
  0x3e   : > { %s720_s13 = smov %s722_s17  ;;  %20 = sbr.rel (!%p18_p1) target bundleno = 8 (0x8), region = 86 }
  0x43   :  { %256 = vsyncpa [#allocation3], 1 }
  0x44   :  { %258 = vsyncpa [#allocation3 + $0x1], 1 }
  0x45   :  { %259 = vsyncpa [#allocation6], 1 }
  0x46   :  { %261 = vsyncpa [#allocation6 + $0x1], 1 }
  0x47   :  { %262 = vsyncpa [#allocation4], 1 }
  0x48   :  { %264 = vsyncpa [#allocation4 + $0x1], 1 }

</bundles_post_ra>
